<compile_context>
chip_gen: v7x
topology: tpu7x:2x2x1
jax: 0.10.0
libtpu: 0.0.40
codegen_flags: <defaults>
</compile_context>

<pallas_src>
import functools

import jax
import jax.numpy as jnp
from jax.experimental import pallas as pl
from jax.experimental.pallas import tpu as pltpu

LANES = 512  # lane width of the batch slab (multiple of 128)


def _mlp_kernel(params_ref, x_ref, o_ref, *, in_dim, hid, out_dim, compute_dtype):
    # params_ref: SMEM f32[in_dim*hid + hid + hid*out_dim + out_dim] (packed w1,b1,w2,b2)
    # x_ref:      (in_dim, block_rows, LANES) VMEM, batch on (sublane, lane)
    # o_ref:      (out_dim, block_rows, LANES) VMEM

    # Hoist every scalar param out of SMEM exactly once per grid step.
    w1 = [[params_ref[k * hid + j].astype(compute_dtype) for j in range(hid)]
          for k in range(in_dim)]
    off = in_dim * hid
    b1 = [params_ref[off + j].astype(compute_dtype) for j in range(hid)]
    off += hid
    w2 = [[params_ref[off + j * out_dim + m].astype(compute_dtype)
           for m in range(out_dim)] for j in range(hid)]
    off += hid * out_dim
    b2 = [params_ref[off + m].astype(compute_dtype) for m in range(out_dim)]

    xs = [x_ref[k].astype(compute_dtype) for k in range(in_dim)]  # (block_rows, LANES)

    # Fused hidden/output accumulation: hidden planes are never materialized.
    accs = [None] * out_dim
    for j in range(hid):
        h = xs[0] * w1[0][j]
        for k in range(1, in_dim):
            h = h + xs[k] * w1[k][j]
        h = jnp.maximum(h + b1[j], 0.0)          # ReLU
        for m in range(out_dim):
            t = h * w2[j][m]
            accs[m] = t if accs[m] is None else accs[m] + t

    for m in range(out_dim):
        o_ref[m] = (accs[m] + b2[m]).astype(o_ref.dtype)


def simple_model_forward(x, w1, b1, w2, b2, *, block_rows=None, compute_dtype=None):
    """x: (B, in_dim); w1: (in_dim, hid); b1: (hid,); w2: (hid, out_dim); b2: (out_dim,).
    Computes relu(x @ w1 + b1) @ w2 + b2 (same math as the PyTorch module with
    weights stored transposed, i.e. (in, out))."""
    B, in_dim = x.shape
    hid = w1.shape[1]
    out_dim = w2.shape[1]
    if compute_dtype is None:
        compute_dtype = x.dtype
    compute_dtype = jnp.dtype(compute_dtype)

    # ---- tile sizing ----
    rows_needed = pl.cdiv(B, LANES)
    if block_rows is None:
        # Largest tile <= 256 rows (256*512 = 128K batch elems / step): amortizes the
        # ~0.35us per-step cost while keeping double-buffered blocks (~6 MiB) inside
        # every generation's default scoped-VMEM budget (v5e 16 MiB, v7x 64 MiB phys).
        block_rows = min(256, 8 * pl.cdiv(rows_needed, 8))
    block_rows = max(8, 8 * pl.cdiv(block_rows, 8))        # multiple of 8 sublanes
    rows = block_rows * pl.cdiv(rows_needed, block_rows)   # pad rows to whole tiles
    b_pad = rows * LANES

    # ---- feature-major relayout: one transpose copy (+ pad only if needed) ----
    xt = x.T                                               # (in_dim, B)
    if b_pad != B:
        xt = jnp.pad(xt, ((0, 0), (0, b_pad - B)))
    x3 = xt.reshape(in_dim, rows, LANES)                   # free reshape

    # ---- single packed SMEM param array ----
    params = jnp.concatenate(
        [w1.reshape(-1), b1.reshape(-1), w2.reshape(-1), b2.reshape(-1)]
    ).astype(jnp.float32)

    kernel = functools.partial(
        _mlp_kernel, in_dim=in_dim, hid=hid, out_dim=out_dim,
        compute_dtype=compute_dtype)

    itemsize = jnp.dtype(x.dtype).itemsize
    cost = pl.CostEstimate(
        flops=2 * b_pad * (in_dim * hid + hid * out_dim),
        transcendentals=0,
        bytes_accessed=itemsize * b_pad * (in_dim + out_dim) + 4 * params.size,
    )

    smem = pl.BlockSpec(memory_space=pltpu.MemorySpace.SMEM)

    out3 = pl.pallas_call(
        kernel,
        out_shape=jax.ShapeDtypeStruct((out_dim, rows, LANES), x.dtype),
        grid_spec=pltpu.PrefetchScalarGridSpec(
            num_scalar_prefetch=0,
            grid=(rows // block_rows,),
            in_specs=[
                smem,  # packed params (scalar operands)
                pl.BlockSpec((in_dim, block_rows, LANES), lambda i: (0, i, 0)),  # x slab
            ],
            out_specs=pl.BlockSpec((out_dim, block_rows, LANES), lambda i: (0, i, 0)),
        ),
        compiler_params=pltpu.CompilerParams(
            dimension_semantics=("parallel",),  # grid steps shard across v7x's 2 TCs
        ),
        cost_estimate=cost,
    )(params, x3)

    # one transpose copy back to (B, out_dim); padded batch slots are sliced off
    out = out3.reshape(out_dim, b_pad)[:, :B].T
    return out


def init_params(key, input_dim=4, hidden_dim=8, output_dim=2):
    """Deterministic init mirroring nn.Linear shapes (PyTorch weight is (out,in);
    we build (in,out) directly, i.e. the transpose)."""
    k1, k2, k3, k4 = jax.random.split(key, 4)
    bound1 = 1.0 / (input_dim ** 0.5)
    bound2 = 1.0 / (hidden_dim ** 0.5)
    w1 = jax.random.uniform(k1, (input_dim, hidden_dim), jnp.float32, -bound1, bound1)
    b1 = jax.random.uniform(k2, (hidden_dim,), jnp.float32, -bound1, bound1)
    w2 = jax.random.uniform(k3, (hidden_dim, output_dim), jnp.float32, -bound2, bound2)
    b2 = jax.random.uniform(k4, (output_dim,), jnp.float32, -bound2, bound2)
    return w1, b1, w2, b2


if __name__ == "__main__":
    key = jax.random.PRNGKey(0)
    kx, kp = jax.random.split(key)

    batch, input_dim, hidden_dim, output_dim = 8, 4, 8, 2
    x = jax.random.normal(kx, (batch, input_dim), jnp.float32)
    w1, b1, w2, b2 = init_params(kp, input_dim, hidden_dim, output_dim)

    # reference in plain JAX (same math as the PyTorch forward)
    ref = jnp.maximum(x @ w1 + b1, 0.0) @ w2 + b2

    # f32 compute path: exact vs. reference
    y = jax.block_until_ready(simple_model_forward(x, w1, b1, w2, b2))
    assert y.shape == (batch, output_dim)
    assert jnp.allclose(y, ref, atol=1e-5, rtol=1e-5)

    # bf16 compute path (halves the binding VALU work on v6e/v7x); looser tolerance
    y_bf16 = jax.block_until_ready(
        simple_model_forward(x, w1, b1, w2, b2, compute_dtype=jnp.bfloat16))
    assert y_bf16.shape == (batch, output_dim)
    assert jnp.allclose(y_bf16, ref, atol=5e-2, rtol=5e-2)

    print("KERNEL_OK")
</pallas_src>

<mosaic_0001>
module attributes {stable_mosaic.version = 11 : i64} {
  func.func @_mlp_kernel(%arg0: i32, %arg1: memref<58xf32, #tpu.memory_space<smem>>, %arg2: memref<4x8x512xf32, #tpu.memory_space<vmem>>, %arg3: memref<2x8x512xf32, #tpu.memory_space<vmem>>) attributes {dimension_semantics = [#tpu.dimension_semantics<parallel>], iteration_bounds = array<i64: 1>, scalar_prefetch = 0 : i64, scratch_operands = 0 : i64, tpu.core_type = #tpu.core_type<tc>, window_params = [{transform_indices = @transform_0, window_bounds = array<i64: 58>}, {transform_indices = @transform_1, window_bounds = array<i64: 4, 8, 512>}, {transform_indices = @transform_2, window_bounds = array<i64: 2, 8, 512>}]} {
    %c0 = arith.constant 0 : index
    %0 = memref.load %arg1[%c0] : memref<58xf32, #tpu.memory_space<smem>>
    %c1 = arith.constant 1 : index
    %1 = memref.load %arg1[%c1] : memref<58xf32, #tpu.memory_space<smem>>
    %c2 = arith.constant 2 : index
    %2 = memref.load %arg1[%c2] : memref<58xf32, #tpu.memory_space<smem>>
    %c3 = arith.constant 3 : index
    %3 = memref.load %arg1[%c3] : memref<58xf32, #tpu.memory_space<smem>>
    %c4 = arith.constant 4 : index
    %4 = memref.load %arg1[%c4] : memref<58xf32, #tpu.memory_space<smem>>
    %c5 = arith.constant 5 : index
    %5 = memref.load %arg1[%c5] : memref<58xf32, #tpu.memory_space<smem>>
    %c6 = arith.constant 6 : index
    %6 = memref.load %arg1[%c6] : memref<58xf32, #tpu.memory_space<smem>>
    %c7 = arith.constant 7 : index
    %7 = memref.load %arg1[%c7] : memref<58xf32, #tpu.memory_space<smem>>
    %c8 = arith.constant 8 : index
    %8 = memref.load %arg1[%c8] : memref<58xf32, #tpu.memory_space<smem>>
    %c9 = arith.constant 9 : index
    %9 = memref.load %arg1[%c9] : memref<58xf32, #tpu.memory_space<smem>>
    %c10 = arith.constant 10 : index
    %10 = memref.load %arg1[%c10] : memref<58xf32, #tpu.memory_space<smem>>
    %c11 = arith.constant 11 : index
    %11 = memref.load %arg1[%c11] : memref<58xf32, #tpu.memory_space<smem>>
    %c12 = arith.constant 12 : index
    %12 = memref.load %arg1[%c12] : memref<58xf32, #tpu.memory_space<smem>>
    %c13 = arith.constant 13 : index
    %13 = memref.load %arg1[%c13] : memref<58xf32, #tpu.memory_space<smem>>
    %c14 = arith.constant 14 : index
    %14 = memref.load %arg1[%c14] : memref<58xf32, #tpu.memory_space<smem>>
    %c15 = arith.constant 15 : index
    %15 = memref.load %arg1[%c15] : memref<58xf32, #tpu.memory_space<smem>>
    %c16 = arith.constant 16 : index
    %16 = memref.load %arg1[%c16] : memref<58xf32, #tpu.memory_space<smem>>
    %c17 = arith.constant 17 : index
    %17 = memref.load %arg1[%c17] : memref<58xf32, #tpu.memory_space<smem>>
    %c18 = arith.constant 18 : index
    %18 = memref.load %arg1[%c18] : memref<58xf32, #tpu.memory_space<smem>>
    %c19 = arith.constant 19 : index
    %19 = memref.load %arg1[%c19] : memref<58xf32, #tpu.memory_space<smem>>
    %c20 = arith.constant 20 : index
    %20 = memref.load %arg1[%c20] : memref<58xf32, #tpu.memory_space<smem>>
    %c21 = arith.constant 21 : index
    %21 = memref.load %arg1[%c21] : memref<58xf32, #tpu.memory_space<smem>>
    %c22 = arith.constant 22 : index
    %22 = memref.load %arg1[%c22] : memref<58xf32, #tpu.memory_space<smem>>
    %c23 = arith.constant 23 : index
    %23 = memref.load %arg1[%c23] : memref<58xf32, #tpu.memory_space<smem>>
    %c24 = arith.constant 24 : index
    %24 = memref.load %arg1[%c24] : memref<58xf32, #tpu.memory_space<smem>>
    %c25 = arith.constant 25 : index
    %25 = memref.load %arg1[%c25] : memref<58xf32, #tpu.memory_space<smem>>
    %c26 = arith.constant 26 : index
    %26 = memref.load %arg1[%c26] : memref<58xf32, #tpu.memory_space<smem>>
    %c27 = arith.constant 27 : index
    %27 = memref.load %arg1[%c27] : memref<58xf32, #tpu.memory_space<smem>>
    %c28 = arith.constant 28 : index
    %28 = memref.load %arg1[%c28] : memref<58xf32, #tpu.memory_space<smem>>
    %c29 = arith.constant 29 : index
    %29 = memref.load %arg1[%c29] : memref<58xf32, #tpu.memory_space<smem>>
    %c30 = arith.constant 30 : index
    %30 = memref.load %arg1[%c30] : memref<58xf32, #tpu.memory_space<smem>>
    %c31 = arith.constant 31 : index
    %31 = memref.load %arg1[%c31] : memref<58xf32, #tpu.memory_space<smem>>
    %c32 = arith.constant 32 : index
    %32 = memref.load %arg1[%c32] : memref<58xf32, #tpu.memory_space<smem>>
    %c33 = arith.constant 33 : index
    %33 = memref.load %arg1[%c33] : memref<58xf32, #tpu.memory_space<smem>>
    %c34 = arith.constant 34 : index
    %34 = memref.load %arg1[%c34] : memref<58xf32, #tpu.memory_space<smem>>
    %c35 = arith.constant 35 : index
    %35 = memref.load %arg1[%c35] : memref<58xf32, #tpu.memory_space<smem>>
    %c36 = arith.constant 36 : index
    %36 = memref.load %arg1[%c36] : memref<58xf32, #tpu.memory_space<smem>>
    %c37 = arith.constant 37 : index
    %37 = memref.load %arg1[%c37] : memref<58xf32, #tpu.memory_space<smem>>
    %c38 = arith.constant 38 : index
    %38 = memref.load %arg1[%c38] : memref<58xf32, #tpu.memory_space<smem>>
    %c39 = arith.constant 39 : index
    %39 = memref.load %arg1[%c39] : memref<58xf32, #tpu.memory_space<smem>>
    %c40 = arith.constant 40 : index
    %40 = memref.load %arg1[%c40] : memref<58xf32, #tpu.memory_space<smem>>
    %c41 = arith.constant 41 : index
    %41 = memref.load %arg1[%c41] : memref<58xf32, #tpu.memory_space<smem>>
    %c42 = arith.constant 42 : index
    %42 = memref.load %arg1[%c42] : memref<58xf32, #tpu.memory_space<smem>>
    %c43 = arith.constant 43 : index
    %43 = memref.load %arg1[%c43] : memref<58xf32, #tpu.memory_space<smem>>
    %c44 = arith.constant 44 : index
    %44 = memref.load %arg1[%c44] : memref<58xf32, #tpu.memory_space<smem>>
    %c45 = arith.constant 45 : index
    %45 = memref.load %arg1[%c45] : memref<58xf32, #tpu.memory_space<smem>>
    %c46 = arith.constant 46 : index
    %46 = memref.load %arg1[%c46] : memref<58xf32, #tpu.memory_space<smem>>
    %c47 = arith.constant 47 : index
    %47 = memref.load %arg1[%c47] : memref<58xf32, #tpu.memory_space<smem>>
    %c48 = arith.constant 48 : index
    %48 = memref.load %arg1[%c48] : memref<58xf32, #tpu.memory_space<smem>>
    %c49 = arith.constant 49 : index
    %49 = memref.load %arg1[%c49] : memref<58xf32, #tpu.memory_space<smem>>
    %c50 = arith.constant 50 : index
    %50 = memref.load %arg1[%c50] : memref<58xf32, #tpu.memory_space<smem>>
    %c51 = arith.constant 51 : index
    %51 = memref.load %arg1[%c51] : memref<58xf32, #tpu.memory_space<smem>>
    %c52 = arith.constant 52 : index
    %52 = memref.load %arg1[%c52] : memref<58xf32, #tpu.memory_space<smem>>
    %c53 = arith.constant 53 : index
    %53 = memref.load %arg1[%c53] : memref<58xf32, #tpu.memory_space<smem>>
    %c54 = arith.constant 54 : index
    %54 = memref.load %arg1[%c54] : memref<58xf32, #tpu.memory_space<smem>>
    %c55 = arith.constant 55 : index
    %55 = memref.load %arg1[%c55] : memref<58xf32, #tpu.memory_space<smem>>
    %c56 = arith.constant 56 : index
    %56 = memref.load %arg1[%c56] : memref<58xf32, #tpu.memory_space<smem>>
    %c57 = arith.constant 57 : index
    %57 = memref.load %arg1[%c57] : memref<58xf32, #tpu.memory_space<smem>>
    %c0_0 = arith.constant 0 : index
    %c0_1 = arith.constant 0 : index
    %c0_2 = arith.constant 0 : index
    %58 = vector.load %arg2[%c0_0, %c0_1, %c0_2] : memref<4x8x512xf32, #tpu.memory_space<vmem>>, vector<1x8x512xf32>
    %59 = vector.shape_cast %58 : vector<1x8x512xf32> to vector<8x512xf32>
    %c1_3 = arith.constant 1 : index
    %c0_4 = arith.constant 0 : index
    %c0_5 = arith.constant 0 : index
    %60 = vector.load %arg2[%c1_3, %c0_4, %c0_5] : memref<4x8x512xf32, #tpu.memory_space<vmem>>, vector<1x8x512xf32>
    %61 = vector.shape_cast %60 : vector<1x8x512xf32> to vector<8x512xf32>
    %c2_6 = arith.constant 2 : index
    %c0_7 = arith.constant 0 : index
    %c0_8 = arith.constant 0 : index
    %62 = vector.load %arg2[%c2_6, %c0_7, %c0_8] : memref<4x8x512xf32, #tpu.memory_space<vmem>>, vector<1x8x512xf32>
    %63 = vector.shape_cast %62 : vector<1x8x512xf32> to vector<8x512xf32>
    %c3_9 = arith.constant 3 : index
    %c0_10 = arith.constant 0 : index
    %c0_11 = arith.constant 0 : index
    %64 = vector.load %arg2[%c3_9, %c0_10, %c0_11] : memref<4x8x512xf32, #tpu.memory_space<vmem>>, vector<1x8x512xf32>
    %65 = vector.shape_cast %64 : vector<1x8x512xf32> to vector<8x512xf32>
    %66 = vector.broadcast %0 : f32 to vector<8x512xf32>
    %67 = arith.mulf %59, %66 : vector<8x512xf32>
    %68 = vector.broadcast %8 : f32 to vector<8x512xf32>
    %69 = arith.mulf %61, %68 : vector<8x512xf32>
    %70 = arith.addf %67, %69 : vector<8x512xf32>
    %71 = vector.broadcast %16 : f32 to vector<8x512xf32>
    %72 = arith.mulf %63, %71 : vector<8x512xf32>
    %73 = arith.addf %70, %72 : vector<8x512xf32>
    %74 = vector.broadcast %24 : f32 to vector<8x512xf32>
    %75 = arith.mulf %65, %74 : vector<8x512xf32>
    %76 = arith.addf %73, %75 : vector<8x512xf32>
    %77 = vector.broadcast %32 : f32 to vector<8x512xf32>
    %78 = arith.addf %76, %77 : vector<8x512xf32>
    %cst = arith.constant 0.000000e+00 : f32
    %79 = vector.broadcast %cst : f32 to vector<8x512xf32>
    %80 = arith.maximumf %78, %79 : vector<8x512xf32>
    %81 = vector.broadcast %40 : f32 to vector<8x512xf32>
    %82 = arith.mulf %80, %81 : vector<8x512xf32>
    %83 = vector.broadcast %41 : f32 to vector<8x512xf32>
    %84 = arith.mulf %80, %83 : vector<8x512xf32>
    %85 = vector.broadcast %1 : f32 to vector<8x512xf32>
    %86 = arith.mulf %59, %85 : vector<8x512xf32>
    %87 = vector.broadcast %9 : f32 to vector<8x512xf32>
    %88 = arith.mulf %61, %87 : vector<8x512xf32>
    %89 = arith.addf %86, %88 : vector<8x512xf32>
    %90 = vector.broadcast %17 : f32 to vector<8x512xf32>
    %91 = arith.mulf %63, %90 : vector<8x512xf32>
    %92 = arith.addf %89, %91 : vector<8x512xf32>
    %93 = vector.broadcast %25 : f32 to vector<8x512xf32>
    %94 = arith.mulf %65, %93 : vector<8x512xf32>
    %95 = arith.addf %92, %94 : vector<8x512xf32>
    %96 = vector.broadcast %33 : f32 to vector<8x512xf32>
    %97 = arith.addf %95, %96 : vector<8x512xf32>
    %cst_12 = arith.constant 0.000000e+00 : f32
    %98 = vector.broadcast %cst_12 : f32 to vector<8x512xf32>
    %99 = arith.maximumf %97, %98 : vector<8x512xf32>
    %100 = vector.broadcast %42 : f32 to vector<8x512xf32>
    %101 = arith.mulf %99, %100 : vector<8x512xf32>
    %102 = arith.addf %82, %101 : vector<8x512xf32>
    %103 = vector.broadcast %43 : f32 to vector<8x512xf32>
    %104 = arith.mulf %99, %103 : vector<8x512xf32>
    %105 = arith.addf %84, %104 : vector<8x512xf32>
    %106 = vector.broadcast %2 : f32 to vector<8x512xf32>
    %107 = arith.mulf %59, %106 : vector<8x512xf32>
    %108 = vector.broadcast %10 : f32 to vector<8x512xf32>
    %109 = arith.mulf %61, %108 : vector<8x512xf32>
    %110 = arith.addf %107, %109 : vector<8x512xf32>
    %111 = vector.broadcast %18 : f32 to vector<8x512xf32>
    %112 = arith.mulf %63, %111 : vector<8x512xf32>
    %113 = arith.addf %110, %112 : vector<8x512xf32>
    %114 = vector.broadcast %26 : f32 to vector<8x512xf32>
    %115 = arith.mulf %65, %114 : vector<8x512xf32>
    %116 = arith.addf %113, %115 : vector<8x512xf32>
    %117 = vector.broadcast %34 : f32 to vector<8x512xf32>
    %118 = arith.addf %116, %117 : vector<8x512xf32>
    %cst_13 = arith.constant 0.000000e+00 : f32
    %119 = vector.broadcast %cst_13 : f32 to vector<8x512xf32>
    %120 = arith.maximumf %118, %119 : vector<8x512xf32>
    %121 = vector.broadcast %44 : f32 to vector<8x512xf32>
    %122 = arith.mulf %120, %121 : vector<8x512xf32>
    %123 = arith.addf %102, %122 : vector<8x512xf32>
    %124 = vector.broadcast %45 : f32 to vector<8x512xf32>
    %125 = arith.mulf %120, %124 : vector<8x512xf32>
    %126 = arith.addf %105, %125 : vector<8x512xf32>
    %127 = vector.broadcast %3 : f32 to vector<8x512xf32>
    %128 = arith.mulf %59, %127 : vector<8x512xf32>
    %129 = vector.broadcast %11 : f32 to vector<8x512xf32>
    %130 = arith.mulf %61, %129 : vector<8x512xf32>
    %131 = arith.addf %128, %130 : vector<8x512xf32>
    %132 = vector.broadcast %19 : f32 to vector<8x512xf32>
    %133 = arith.mulf %63, %132 : vector<8x512xf32>
    %134 = arith.addf %131, %133 : vector<8x512xf32>
    %135 = vector.broadcast %27 : f32 to vector<8x512xf32>
    %136 = arith.mulf %65, %135 : vector<8x512xf32>
    %137 = arith.addf %134, %136 : vector<8x512xf32>
    %138 = vector.broadcast %35 : f32 to vector<8x512xf32>
    %139 = arith.addf %137, %138 : vector<8x512xf32>
    %cst_14 = arith.constant 0.000000e+00 : f32
    %140 = vector.broadcast %cst_14 : f32 to vector<8x512xf32>
    %141 = arith.maximumf %139, %140 : vector<8x512xf32>
    %142 = vector.broadcast %46 : f32 to vector<8x512xf32>
    %143 = arith.mulf %141, %142 : vector<8x512xf32>
    %144 = arith.addf %123, %143 : vector<8x512xf32>
    %145 = vector.broadcast %47 : f32 to vector<8x512xf32>
    %146 = arith.mulf %141, %145 : vector<8x512xf32>
    %147 = arith.addf %126, %146 : vector<8x512xf32>
    %148 = vector.broadcast %4 : f32 to vector<8x512xf32>
    %149 = arith.mulf %59, %148 : vector<8x512xf32>
    %150 = vector.broadcast %12 : f32 to vector<8x512xf32>
    %151 = arith.mulf %61, %150 : vector<8x512xf32>
    %152 = arith.addf %149, %151 : vector<8x512xf32>
    %153 = vector.broadcast %20 : f32 to vector<8x512xf32>
    %154 = arith.mulf %63, %153 : vector<8x512xf32>
    %155 = arith.addf %152, %154 : vector<8x512xf32>
    %156 = vector.broadcast %28 : f32 to vector<8x512xf32>
    %157 = arith.mulf %65, %156 : vector<8x512xf32>
    %158 = arith.addf %155, %157 : vector<8x512xf32>
    %159 = vector.broadcast %36 : f32 to vector<8x512xf32>
    %160 = arith.addf %158, %159 : vector<8x512xf32>
    %cst_15 = arith.constant 0.000000e+00 : f32
    %161 = vector.broadcast %cst_15 : f32 to vector<8x512xf32>
    %162 = arith.maximumf %160, %161 : vector<8x512xf32>
    %163 = vector.broadcast %48 : f32 to vector<8x512xf32>
    %164 = arith.mulf %162, %163 : vector<8x512xf32>
    %165 = arith.addf %144, %164 : vector<8x512xf32>
    %166 = vector.broadcast %49 : f32 to vector<8x512xf32>
    %167 = arith.mulf %162, %166 : vector<8x512xf32>
    %168 = arith.addf %147, %167 : vector<8x512xf32>
    %169 = vector.broadcast %5 : f32 to vector<8x512xf32>
    %170 = arith.mulf %59, %169 : vector<8x512xf32>
    %171 = vector.broadcast %13 : f32 to vector<8x512xf32>
    %172 = arith.mulf %61, %171 : vector<8x512xf32>
    %173 = arith.addf %170, %172 : vector<8x512xf32>
    %174 = vector.broadcast %21 : f32 to vector<8x512xf32>
    %175 = arith.mulf %63, %174 : vector<8x512xf32>
    %176 = arith.addf %173, %175 : vector<8x512xf32>
    %177 = vector.broadcast %29 : f32 to vector<8x512xf32>
    %178 = arith.mulf %65, %177 : vector<8x512xf32>
    %179 = arith.addf %176, %178 : vector<8x512xf32>
    %180 = vector.broadcast %37 : f32 to vector<8x512xf32>
    %181 = arith.addf %179, %180 : vector<8x512xf32>
    %cst_16 = arith.constant 0.000000e+00 : f32
    %182 = vector.broadcast %cst_16 : f32 to vector<8x512xf32>
    %183 = arith.maximumf %181, %182 : vector<8x512xf32>
    %184 = vector.broadcast %50 : f32 to vector<8x512xf32>
    %185 = arith.mulf %183, %184 : vector<8x512xf32>
    %186 = arith.addf %165, %185 : vector<8x512xf32>
    %187 = vector.broadcast %51 : f32 to vector<8x512xf32>
    %188 = arith.mulf %183, %187 : vector<8x512xf32>
    %189 = arith.addf %168, %188 : vector<8x512xf32>
    %190 = vector.broadcast %6 : f32 to vector<8x512xf32>
    %191 = arith.mulf %59, %190 : vector<8x512xf32>
    %192 = vector.broadcast %14 : f32 to vector<8x512xf32>
    %193 = arith.mulf %61, %192 : vector<8x512xf32>
    %194 = arith.addf %191, %193 : vector<8x512xf32>
    %195 = vector.broadcast %22 : f32 to vector<8x512xf32>
    %196 = arith.mulf %63, %195 : vector<8x512xf32>
    %197 = arith.addf %194, %196 : vector<8x512xf32>
    %198 = vector.broadcast %30 : f32 to vector<8x512xf32>
    %199 = arith.mulf %65, %198 : vector<8x512xf32>
    %200 = arith.addf %197, %199 : vector<8x512xf32>
    %201 = vector.broadcast %38 : f32 to vector<8x512xf32>
    %202 = arith.addf %200, %201 : vector<8x512xf32>
    %cst_17 = arith.constant 0.000000e+00 : f32
    %203 = vector.broadcast %cst_17 : f32 to vector<8x512xf32>
    %204 = arith.maximumf %202, %203 : vector<8x512xf32>
    %205 = vector.broadcast %52 : f32 to vector<8x512xf32>
    %206 = arith.mulf %204, %205 : vector<8x512xf32>
    %207 = arith.addf %186, %206 : vector<8x512xf32>
    %208 = vector.broadcast %53 : f32 to vector<8x512xf32>
    %209 = arith.mulf %204, %208 : vector<8x512xf32>
    %210 = arith.addf %189, %209 : vector<8x512xf32>
    %211 = vector.broadcast %7 : f32 to vector<8x512xf32>
    %212 = arith.mulf %59, %211 : vector<8x512xf32>
    %213 = vector.broadcast %15 : f32 to vector<8x512xf32>
    %214 = arith.mulf %61, %213 : vector<8x512xf32>
    %215 = arith.addf %212, %214 : vector<8x512xf32>
    %216 = vector.broadcast %23 : f32 to vector<8x512xf32>
    %217 = arith.mulf %63, %216 : vector<8x512xf32>
    %218 = arith.addf %215, %217 : vector<8x512xf32>
    %219 = vector.broadcast %31 : f32 to vector<8x512xf32>
    %220 = arith.mulf %65, %219 : vector<8x512xf32>
    %221 = arith.addf %218, %220 : vector<8x512xf32>
    %222 = vector.broadcast %39 : f32 to vector<8x512xf32>
    %223 = arith.addf %221, %222 : vector<8x512xf32>
    %cst_18 = arith.constant 0.000000e+00 : f32
    %224 = vector.broadcast %cst_18 : f32 to vector<8x512xf32>
    %225 = arith.maximumf %223, %224 : vector<8x512xf32>
    %226 = vector.broadcast %54 : f32 to vector<8x512xf32>
    %227 = arith.mulf %225, %226 : vector<8x512xf32>
    %228 = arith.addf %207, %227 : vector<8x512xf32>
    %229 = vector.broadcast %55 : f32 to vector<8x512xf32>
    %230 = arith.mulf %225, %229 : vector<8x512xf32>
    %231 = arith.addf %210, %230 : vector<8x512xf32>
    %232 = vector.broadcast %56 : f32 to vector<8x512xf32>
    %233 = arith.addf %228, %232 : vector<8x512xf32>
    %c0_19 = arith.constant 0 : index
    %c0_20 = arith.constant 0 : index
    %c0_21 = arith.constant 0 : index
    %234 = vector.load %arg3[%c0_19, %c0_20, %c0_21] : memref<2x8x512xf32, #tpu.memory_space<vmem>>, vector<1x8x512xf32>
    %235 = vector.shape_cast %234 : vector<1x8x512xf32> to vector<8x512xf32>
    %236 = vector.shape_cast %233 : vector<8x512xf32> to vector<1x8x512xf32>
    tpu.vector_store %arg3[%c0_19, %c0_20, %c0_21], %236 {strides = array<i32>} : memref<2x8x512xf32, #tpu.memory_space<vmem>>, vector<1x8x512xf32>,
    %237 = vector.broadcast %57 : f32 to vector<8x512xf32>
    %238 = arith.addf %231, %237 : vector<8x512xf32>
    %c1_22 = arith.constant 1 : index
    %c0_23 = arith.constant 0 : index
    %c0_24 = arith.constant 0 : index
    %239 = vector.load %arg3[%c1_22, %c0_23, %c0_24] : memref<2x8x512xf32, #tpu.memory_space<vmem>>, vector<1x8x512xf32>
    %240 = vector.shape_cast %239 : vector<1x8x512xf32> to vector<8x512xf32>
    %241 = vector.shape_cast %238 : vector<8x512xf32> to vector<1x8x512xf32>
    tpu.vector_store %arg3[%c1_22, %c0_23, %c0_24], %241 {strides = array<i32>} : memref<2x8x512xf32, #tpu.memory_space<vmem>>, vector<1x8x512xf32>,
    return
  }
  func.func @transform_0(%arg0: i32) -> i32 {
    %c0_i32 = arith.constant 0 : i32
    %c0_i32_0 = arith.constant 0 : i32
    return %c0_i32 : i32
  }
  func.func @transform_1(%arg0: i32) -> (i32, i32, i32) {
    %c0_i32 = arith.constant 0 : i32
    %c0_i32_0 = arith.constant 0 : i32
    %c0_i32_1 = arith.constant 0 : i32
    return %c0_i32, %arg0, %c0_i32_0 : i32, i32, i32
  }
  func.func @transform_2(%arg0: i32) -> (i32, i32, i32) {
    %c0_i32 = arith.constant 0 : i32
    %c0_i32_0 = arith.constant 0 : i32
    %c0_i32_1 = arith.constant 0 : i32
    return %c0_i32, %arg0, %c0_i32_0 : i32, i32, i32
  }
}

</mosaic_0001>

<bundles_post_ra>
// kernel: tpu_custom_call.1
= control target key start
LH: loop header
LB: loop body
LE: loop exit
PB: predicated region body
PF: predicated region fallthrough
CT: control target
= control target key end

     0   :  { %7 = vsyncpa [#allocation5], 0  ;;  %s1610_s0 = inlined_call_operand.hbm [shape: f32[58], index: 0, kind: input, shape index: {}]   ;;  %s1611_s1 = inlined_call_operand.hbm [shape: f32[4,8,512], index: 1, kind: input, shape index: {}]   ;;  %s1612_s2 = inlined_call_operand.hbm [shape: f32[2,8,512], index: 2, kind: output, shape index: {}]  }
   0x1   :  { %8 = vsyncpa [#allocation3], 0 }
   0x2   :  { %9 = vsyncpa [#allocation4], 0  ;;  %s677_s11 = scalar_lea.hbm %s1610_s0, 16 }
   0x3   :  { %p678_p0 = scmp.ne.s32.totalorder %s1610_s0, %s677_s11  ;;  %p681_p1 = scmp.lt.u32.totalorder %s677_s11, %s1610_s0 }
   0x5   :  { %p683_p2 = pnand %p681_p1, %p678_p0 }
   0x7   :  { %686 = shalt.err (!%p683_p2)
}
   0x8   :  { %s737_s16 = smov [#allocation2]   ;;  %s738_s19 = smov [#allocation6]  }
   0x9   :  { %17 = dma.hbm_to_smem %s1610_s0, 16, %s737_s16, [#allocation5]  }
   0xa   :  { %s23_s20 = sshll.u32 %s738_s19, 4  ;;  %s687_s23 = scalar_lea.hbm %s1611_s1, 2048  ;;  %s24_s20 = int_to_ptr.vmem [resolvable:$true] %s23_s20 }
   0xb   :  { %p688_p3 = scmp.ne.s32.totalorder %s1611_s1, %s687_s23  ;;  %p691_p4 = scmp.lt.u32.totalorder %s687_s23, %s1611_s1 }
   0xd   :  { %p693_p5 = pnand %p691_p4, %p688_p3 }
   0xf   :  { %696 = shalt.err (!%p693_p5)
}
  0x10   :  { %s697_s28 = scalar_lea.vmem %s24_s20, 2048  ;;  %p702_p7 = scmp.lt.s32.totalorder %s24_s20, %s24_s20 }
  0x11   :  { %p698_p6 = scmp.ne.s32.totalorder %s24_s20, %s697_s28  ;;  %p703_p8 = scmp.lt.s32.totalorder %s697_s28, %s697_s28 }
  0x13   :  { %p704_p9 = por %p703_p8, %p702_p7 }
  0x15   :  { %p705_p10 = pnand %p704_p9, %p698_p6 }
  0x17   :  { %708 = shalt.err (!%p705_p10)
}
  0x18   :  { %s739_s0 = smov 512   ;;  %s740_s29 = smov 32  }
  0x19   :  { %29 = dma.hbm_to_vmem [thread:$0]  %s1611_s1, 2048, %s24_s20, [#allocation3], %s739_s0, %s739_s0, %s740_s29  }
  0x1a   :  { %731 = dma.done.wait [#allocation5], 16  }
  0x1b   :  { %732 = vsyncadd [#allocation5], 4294967280 }
  0x1c   :  { %733 = dma.done.wait [#allocation3], 2048  }
  0x1d   :  { %734 = vsyncadd [#allocation3], 4294965248 }
  0x1e   :  { %36 = sfence }
  0x1f   :  { %s37_s4 = sld [smem:[#allocation2]]  ;;  %s615_s5 = sld [smem:[#allocation2 + $0x1]]  ;;  %v95_v0 = vld [vmem:[#allocation6] sm:$0xff] }
  0x20   :  { %s616_s6 = sld [smem:[#allocation2 + $0x2]]  ;;  %s617_s7 = sld [smem:[#allocation2 + $0x3]]  ;;  %v806_v7 = vld [vmem:[#allocation6 + $0x20] sm:$0xff] }
  0x21   :  { %s618_s8 = sld [smem:[#allocation2 + $0x4]]  ;;  %s619_s9 = sld [smem:[#allocation2 + $0x5]]  ;;  %v852_v24 = vld [vmem:[#allocation6 + $0x40] sm:$0xff] }
  0x22   :  { %s620_s10 = sld [smem:[#allocation2 + $0x6]]  ;;  %s621_s11 = sld [smem:[#allocation2 + $0x7]]  ;;  %v896_v41 = vld [vmem:[#allocation6 + $0x60] sm:$0xff] }
  0x23   :  { %s622_s12 = sld [smem:[#allocation2 + $0x8]]  ;;  %s623_s13 = sld [smem:[#allocation2 + $0x9]] }
  0x24   :  { %s784_s14 = sld [smem:[#allocation2 + $0xa]]  ;;  %s786_s15 = sld [smem:[#allocation2 + $0xb]] }
  0x25   :  { %s788_s1 = sld [smem:[#allocation2 + $0xc]]  ;;  %s790_s16 = sld [smem:[#allocation2 + $0xd]]  ;;  %v792_v1 = vstv %s37_s4  ;;  %v794_v2 = vstv %s615_s5 }
  0x26   :  { %1691 = vst [vmem:[#allocation11_spill] sm:$0xff] %v792_v1  ;;  %1692 = vst [vmem:[#allocation12_spill] sm:$0xff] %v794_v2  ;;  %v115_v3 = vmul.f32 %v792_v1, %v95_v0  ;;  %v166_v4 = vmul.f32 %v794_v2, %v95_v0  ;;  %v798_v5 = vstv %s616_s6  ;;  %v800_v6 = vstv %s617_s7  ;;  %s802_s17 = sld [smem:[#allocation2 + $0x10]]  ;;  %s804_s18 = sld [smem:[#allocation2 + $0x11]] }
  0x27   :  { %1693 = vst [vmem:[#allocation13_spill] sm:$0xff] %v798_v5  ;;  %1694 = vst [vmem:[#allocation14_spill] sm:$0xff] %v800_v6  ;;  %v225_v8 = vmul.f32 %v798_v5, %v95_v0  ;;  %v284_v9 = vmul.f32 %v800_v6, %v95_v0  ;;  %v810_v10 = vstv %s618_s8  ;;  %v812_v11 = vstv %s619_s9  ;;  %s814_s19 = sld [smem:[#allocation2 + $0x12]]  ;;  %s816_s20 = sld [smem:[#allocation2 + $0x13]] }
  0x28   :  { %v343_v12 = vmul.f32 %v810_v10, %v95_v0  ;;  %v402_v13 = vmul.f32 %v812_v11, %v95_v0  ;;  %v820_v14 = vstv %s620_s10  ;;  %v822_v15 = vstv %s621_s11  ;;  %s824_s21 = sld [smem:[#allocation2 + $0x14]]  ;;  %s836_s22 = sld [smem:[#allocation2 + $0x15]] }
  0x29   :  { %1695 = vst [vmem:[#allocation15_spill] sm:$0xff] %v822_v15  ;;  %v826_v16 = vstv %s622_s12  ;;  %v828_v17 = vstv %s623_s13  ;;  %v831_v18 = vmul.f32 %v820_v14, %v95_v0  ;;  %v834_v19 = vmul.f32 %v822_v15, %v95_v0  ;;  %s848_s23 = sld [smem:[#allocation2 + $0x18]]  ;;  %s850_s24 = sld [smem:[#allocation2 + $0x19]] }
  0x2a   :  { %1696 = vst [vmem:[#allocation16_spill] sm:$0xff] %v828_v17  ;;  %v120_v20 = vmul.f32 %v826_v16, %v806_v7  ;;  %v171_v21 = vmul.f32 %v828_v17, %v806_v7  ;;  %v843_v22 = vstv %s784_s14  ;;  %v846_v23 = vstv %s786_s15  ;;  %s864_s25 = sld [smem:[#allocation2 + $0x1a]]  ;;  %s866_s26 = sld [smem:[#allocation2 + $0x1b]] }
  0x2b   :  { %v230_v25 = vmul.f32 %v843_v22, %v806_v7  ;;  %v289_v26 = vmul.f32 %v846_v23, %v806_v7  ;;  %v859_v27 = vstv %s788_s1  ;;  %v862_v28 = vstv %s790_s16  ;;  %s872_s27 = sld [smem:[#allocation2 + $0x1c]]  ;;  %s880_s28 = sld [smem:[#allocation2 + $0x1d]] }
  0x2c   :  { %v124_v29 = vadd.f32 %v120_v20, %v115_v3  ;;  %v175_v30 = vadd.f32 %v171_v21, %v166_v4  ;;  %v348_v31 = vmul.f32 %v859_v27, %v806_v7  ;;  %v407_v32 = vmul.f32 %v862_v28, %v806_v7  ;;  %s892_s30 = sld [smem:[#allocation2 + $0x20]]  ;;  %s894_s3 = sld [smem:[#allocation2 + $0x21]] }
  0x2d   :  { %v875_v33 = vstv %s802_s17  ;;  %v878_v34 = vstv %s804_s18  ;;  %v234_v35 = vadd.f32 %v230_v25, %v225_v8  ;;  %v293_v36 = vadd.f32 %v289_v26, %v284_v9  ;;  %s905_s4 = sld [smem:[#allocation2 + $0x22]]  ;;  %s907_s5 = sld [smem:[#allocation2 + $0x23]] }
  0x2e   :  { %1697 = vst [vmem:[#allocation17_spill] sm:$0xff] %v878_v34  ;;  %v129_v37 = vmul.f32 %v875_v33, %v852_v24  ;;  %v180_v38 = vmul.f32 %v878_v34, %v852_v24  ;;  %v887_v39 = vstv %s814_s19  ;;  %v890_v40 = vstv %s816_s20  ;;  %s913_s6 = sld [smem:[#allocation2 + $0xe]]  ;;  %s915_s7 = sld [smem:[#allocation2 + $0x24]] }
  0x2f   :  { %1698 = vst [vmem:[#allocation18_spill] sm:$0xff] %v887_v39  ;;  %v239_v42 = vmul.f32 %v887_v39, %v852_v24  ;;  %v298_v43 = vmul.f32 %v890_v40, %v852_v24  ;;  %v352_v44 = vadd.f32 %v348_v31, %v343_v12  ;;  %v903_v45 = vstv %s824_s21  ;;  %s923_s8 = sld [smem:[#allocation2 + $0x16]]  ;;  %s925_s9 = sld [smem:[#allocation2 + $0x25]] }
  0x30   :  { %v133_v46 = vadd.f32 %v129_v37, %v124_v29  ;;  %v184_v47 = vadd.f32 %v180_v38, %v175_v30  ;;  %v357_v48 = vmul.f32 %v903_v45, %v852_v24  ;;  %v911_v49 = vadd.f32 %v407_v32, %v402_v13  ;;  %s937_s10 = sld [smem:[#allocation2 + $0x28]]  ;;  %s939_s11 = sld [smem:[#allocation2 + $0x2a]] }
  0x31   :  { %v918_v50 = vstv %s848_s23  ;;  %v921_v51 = vstv %s850_s24  ;;  %v243_v52 = vadd.f32 %v239_v42, %v234_v35  ;;  %v302_v53 = vadd.f32 %v298_v43, %v293_v36  ;;  %s948_s12 = sld [smem:[#allocation2 + $0x2c]]  ;;  %s950_s13 = sld [smem:[#allocation2 + $0x2e]] }
  0x32   :  { %1699 = vst [vmem:[#allocation19_spill] sm:$0xff] %v918_v50  ;;  %1700 = vst [vmem:[#allocation20_spill] sm:$0xff] %v921_v51  ;;  %v138_v54 = vmul.f32 %v918_v50, %v896_v41  ;;  %v189_v55 = vmul.f32 %v921_v51, %v896_v41  ;;  %v932_v56 = vstv %s864_s25  ;;  %v935_v57 = vstv %s866_s26  ;;  %s957_s14 = sld [smem:[#allocation2 + $0x30]]  ;;  %s959_s15 = sld [smem:[#allocation2 + $0x32]] }
  0x33   :  { %1701 = vst [vmem:[#allocation21_spill] sm:$0xff] %v932_v56  ;;  %v248_v58 = vmul.f32 %v932_v56, %v896_v41  ;;  %v307_v59 = vmul.f32 %v935_v57, %v896_v41  ;;  %v361_v60 = vadd.f32 %v357_v48, %v352_v44  ;;  %v946_v61 = vstv %s872_s27  ;;  %s967_s1 = sld [smem:[#allocation2 + $0x1e]]  ;;  %s983_s17 = sld [smem:[#allocation2 + $0x34]] }
  0x34   :  { %v142_v62 = vadd.f32 %v138_v54, %v133_v46  ;;  %v193_v63 = vadd.f32 %v189_v55, %v184_v47  ;;  %v366_v0 = vmul.f32 %v946_v61, %v896_v41  ;;  %v955_v3 = vstv %s836_s22  ;;  %s981_s16 = sld [smem:[#allocation2 + $0x26]]  ;;  %s994_s18 = sld [smem:[#allocation2 + $0xf]] }
  0x35   :  { %v962_v4 = vstv %s892_s30  ;;  %v965_v8 = vstv %s894_s3  ;;  %v252_v9 = vadd.f32 %v248_v58, %v243_v52  ;;  %v311_v12 = vadd.f32 %v307_v59, %v302_v53  ;;  %s996_s19 = sld [smem:[#allocation2 + $0x17]]  ;;  %s1029_s22 = sld [smem:[#allocation2 + $0x36]] }
  0x36   :  { %v970_v13 = vadd.f32 %v962_v4, %v142_v62  ;;  %v973_v20 = vadd.f32 %v965_v8, %v193_v63  ;;  %v976_v21 = vstv %s905_s4  ;;  %v979_v25 = vstv %s907_s5  ;;  %s1005_s20 = sld [smem:[#allocation2 + $0x1f]]  ;;  %s1031_s23 = sld [smem:[#allocation2 + $0x38]] }
  0x37   :  { %v986_v26 = vadd.f32 %v976_v21, %v252_v9  ;;  %v989_v29 = vadd.f32 %v979_v25, %v311_v12  ;;  %v370_v30 = vadd.f32 %v366_v0, %v361_v60  ;;  %v992_v31 = vstv %s915_s7  ;;  %s1007_s21 = sld [smem:[#allocation2 + $0x27]]  ;;  %s1446_s24 = sld [smem:[#allocation2 + $0x29]] }
  0x38   :  { %1702 = vst [vmem:[#allocation22_spill] sm:$0xff] %v970_v13  ;;  %1703 = vst [vmem:[#allocation23_spill] sm:$0xff] %v973_v20  ;;  %v1616_v32 = vmax.f32 %v970_v13, 0.0  ;;  %v1615_v35 = vmax.f32 %v973_v20, 0.0  ;;  %v416_v36 = vmul.f32 %v955_v3, %v852_v24  ;;  %v1003_v37 = vstv %s880_s28  ;;  %v1095_v20 = vld [vmem:[#allocation6 + $0x8] sm:$0xff]  ;;  %s1459_s25 = sld [smem:[#allocation2 + $0x2b]] }
  0x39   :  { %1704 = vst [vmem:[#allocation24_spill] sm:$0xff] %v986_v26  ;;  %1705 = vst [vmem:[#allocation25_spill] sm:$0xff] %v989_v29  ;;  %v1010_v38 = vstv %s937_s10  ;;  %v1013_v42 = vstv %s939_s11  ;;  %v1614_v43 = vmax.f32 %v986_v26, 0.0  ;;  %v1613_v44 = vmax.f32 %v989_v29, 0.0  ;;  %v1102_v13 = vld [vmem:[#allocation6 + $0x48] sm:$0xff]  ;;  %s1461_s26 = sld [smem:[#allocation2 + $0x2d]] }
  0x3a   :  { %v156_v46 = vmul.f32 %v1010_v38, %v1616_v32  ;;  %v207_v47 = vmul.f32 %v1013_v42, %v1615_v35  ;;  %v1024_v48 = vstv %s948_s12  ;;  %v1027_v52 = vstv %s950_s13  ;;  %s1475_s27 = sld [smem:[#allocation2 + $0x2f]]  ;;  %s1477_s28 = sld [smem:[#allocation2 + $0x31]] }
  0x3b   :  { %1706 = vst [vmem:[#allocation26_spill] sm:$0xff] %v1027_v52  ;;  %v266_v53 = vmul.f32 %v1024_v48, %v1614_v43  ;;  %v325_v54 = vmul.f32 %v1027_v52, %v1613_v44  ;;  %v1040_v55 = vadd.f32 %v992_v31, %v370_v30  ;;  %v1043_v58 = vstv %s957_s14  ;;  %s1489_s30 = sld [smem:[#allocation2 + $0x33]]  ;;  %s1501_s3 = sld [smem:[#allocation2 + $0x35]] }
  0x3c   :  { %1708 = vst [vmem:[#allocation28_spill] sm:$0xff] %v1043_v58  ;;  %v211_v59 = vadd.f32 %v207_v47, %v156_v46  ;;  %v420_v60 = vadd.f32 %v416_v36, %v911_v49  ;;  %v425_v62 = vmul.f32 %v1003_v37, %v896_v41  ;;  %v1049_v63 = vstv %s925_s9  ;;  %s669_s4 = sld [smem:[#allocation2 + $0x37]]  ;;  %s671_s5 = sld [smem:[#allocation2 + $0x39]] }
  0x3d   :  { %1707 = vst [vmem:[#allocation27_spill] sm:$0xff] %v1040_v55  ;;  %1709 = vst [vmem:[#allocation29_spill] sm:$0xff] %v1049_v63  ;;  %v1618_v0 = vmax.f32 %v1040_v55, 0.0  ;;  %v1053_v9 = vstv %s959_s15  ;;  %v1056_v12 = vstv %s913_s6  ;;  %v1059_v30 = vstv %s923_s8  ;;  %s741_s6 = smov [#allocation7]  }
  0x3e   :  { %1710 = vst [vmem:[#allocation30_spill] sm:$0xff] %v1053_v9  ;;  %v270_v46 = vadd.f32 %v266_v53, %v211_v59  ;;  %v429_v47 = vadd.f32 %v425_v62, %v420_v60  ;;  %v466_v49 = vmul.f32 %v1056_v12, %v806_v7  ;;  %v475_v36 = vmul.f32 %v1059_v30, %v852_v24  ;;  %s602_s7 = sshll.u32 %s741_s6, 4  ;;  %s603_s7 = int_to_ptr.vmem [resolvable:$true] %s602_s7 }
  0x3f   :  { %v384_v44 = vmul.f32 %v1043_v58, %v1618_v0  ;;  %v1069_v43 = vstv %s967_s1  ;;  %v1072_v35 = vstv %s981_s16  ;;  %v1075_v32 = vstv %s983_s17  ;;  %s709_s8 = scalar_lea.vmem %s603_s7, 1024  ;;  %p714_p12 = scmp.lt.s32.totalorder %s603_s7, %s603_s7 }
  0x40   :  { %1711 = vst [vmem:[#allocation31_spill] sm:$0xff] %v1072_v35  ;;  %v329_v29 = vadd.f32 %v325_v54, %v270_v46  ;;  %v1078_v53 = vadd.f32 %v1049_v63, %v429_v47  ;;  %v470_v59 = vadd.f32 %v466_v49, %v831_v18  ;;  %v484_v60 = vmul.f32 %v1069_v43, %v896_v41  ;;  %v1100_v49 = vld [vmem:[#allocation6 + $0x28] sm:$0xff]  ;;  %p710_p11 = scmp.ne.s32.totalorder %s603_s7, %s709_s8  ;;  %p715_p13 = scmp.lt.s32.totalorder %s709_s8, %s709_s8 }
  0x41   :  { %v1084_v62 = vstv %s994_s18  ;;  %v1087_v0 = vstv %s996_s19  ;;  %v1090_v55 = vstv %s1005_s20  ;;  %v1093_v26 = vstv %s1007_s21  ;;  %v1104_v63 = vld [vmem:[#allocation6 + $0x68] sm:$0xff] }
  0x42   :  { %1712 = vst [vmem:[#allocation32_spill] sm:$0xff] %v1078_v53  ;;  %1713 = vst [vmem:[#allocation33_spill] sm:$0xff] %v1084_v62  ;;  %v388_v54 = vadd.f32 %v384_v44, %v329_v29  ;;  %v1636_v46 = vmax.f32 %v1078_v53, 0.0  ;;  %v479_v47 = vadd.f32 %v475_v36, %v470_v59  ;;  %v525_v18 = vmul.f32 %v1084_v62, %v806_v7  ;;  %p716_p0 = por %p715_p13, %p714_p12 }
  0x43   :  { %1714 = vst [vmem:[#allocation34_spill] sm:$0xff] %v1087_v0  ;;  %1715 = vst [vmem:[#allocation35_spill] sm:$0xff] %v1090_v55  ;;  %v534_v58 = vmul.f32 %v1087_v0, %v852_v24  ;;  %v543_v52 = vmul.f32 %v1090_v55, %v896_v41  ;;  %v1111_v15 = vstv %s1029_s22  ;;  %v1114_v29 = vstv %s1031_s23 }
  0x44   :  { %v443_v7 = vmul.f32 %v1053_v9, %v1636_v46  ;;  %v488_v44 = vadd.f32 %v484_v60, %v479_v47  ;;  %v529_v36 = vadd.f32 %v525_v18, %v834_v19  ;;  %v116_v59 = vmul.f32 %v792_v1, %v1095_v20  ;;  %p717_p1 = pnand %p716_p0, %p710_p11 }
  0x45   :  { %v121_v24 = vmul.f32 %v826_v16, %v1100_v49  ;;  %v130_v41 = vmul.f32 %v875_v33, %v1102_v13  ;;  %v139_v55 = vmul.f32 %v918_v50, %v1104_v63  ;;  %v167_v53 = vmul.f32 %v794_v2, %v1095_v20 }
  0x46   :  { %v447_v0 = vadd.f32 %v443_v7, %v388_v54  ;;  %v1131_v60 = vadd.f32 %v1072_v35, %v488_v44  ;;  %v538_v19 = vadd.f32 %v534_v58, %v529_v36  ;;  %v172_v47 = vmul.f32 %v828_v17, %v1100_v49 }
  0x47   :  { %v125_v18 = vadd.f32 %v121_v24, %v116_v59  ;;  %v181_v46 = vmul.f32 %v878_v34, %v1102_v13  ;;  %v190_v9 = vmul.f32 %v921_v51, %v1104_v63  ;;  %v226_v50 = vmul.f32 %v798_v5, %v1095_v20 }
  0x48   :  { %1716 = vst [vmem:[#allocation36_spill] sm:$0xff] %v1131_v60  ;;  %v1652_v2 = vmax.f32 %v1131_v60, 0.0  ;;  %v547_v54 = vadd.f32 %v543_v52, %v538_v19  ;;  %v176_v7 = vadd.f32 %v172_v47, %v167_v53  ;;  %v231_v58 = vmul.f32 %v843_v22, %v1100_v49 }
  0x49   :  { %v134_v44 = vadd.f32 %v130_v41, %v125_v18  ;;  %v240_v36 = vmul.f32 %v887_v39, %v1102_v13  ;;  %v249_v59 = vmul.f32 %v932_v56, %v1104_v63  ;;  %v285_v24 = vmul.f32 %v800_v6, %v1095_v20 }
  0x4a   :  { %v502_v5 = vmul.f32 %v1075_v32, %v1652_v2  ;;  %v1154_v52 = vadd.f32 %v1093_v26, %v547_v54  ;;  %v185_v53 = vadd.f32 %v181_v46, %v176_v7  ;;  %v235_v19 = vadd.f32 %v231_v58, %v226_v50 }
  0x4b   :  { %v143_v47 = vadd.f32 %v139_v55, %v134_v44  ;;  %v290_v41 = vmul.f32 %v846_v23, %v1100_v49  ;;  %v299_v18 = vmul.f32 %v890_v40, %v1102_v13  ;;  %v308_v56 = vmul.f32 %v935_v57, %v1104_v63 }
  0x4c   :  { %1717 = vst [vmem:[#allocation37_spill] sm:$0xff] %v1154_v52  ;;  %v506_v6 = vadd.f32 %v502_v5, %v447_v0  ;;  %v1653_v60 = vmax.f32 %v1154_v52, 0.0  ;;  %v194_v39 = vadd.f32 %v190_v9, %v185_v53  ;;  %v244_v2 = vadd.f32 %v240_v36, %v235_v19 }
  0x4d   :  { %v1164_v54 = vadd.f32 %v962_v4, %v143_v47  ;;  %v294_v46 = vadd.f32 %v290_v41, %v285_v24  ;;  %v344_v50 = vmul.f32 %v810_v10, %v1095_v20  ;;  %v349_v55 = vmul.f32 %v859_v27, %v1100_v49 }
  0x4e   :  { %v561_v7 = vmul.f32 %v1111_v15, %v1653_v60  ;;  %v1174_v5 = vadd.f32 %v965_v8, %v194_v39  ;;  %v253_v0 = vadd.f32 %v249_v59, %v244_v2  ;;  %v358_v9 = vmul.f32 %v903_v45, %v1102_v13 }
  0x4f   :  { %1718 = vst [vmem:[#allocation38_spill] sm:$0xff] %v1164_v54  ;;  %v1656_v58 = vmax.f32 %v1164_v54, 0.0  ;;  %v303_v44 = vadd.f32 %v299_v18, %v294_v46  ;;  %v353_v36 = vadd.f32 %v349_v55, %v344_v50  ;;  %v367_v24 = vmul.f32 %v946_v61, %v1104_v63  ;;  %v1728_v54 = vld [vmem:[#allocation29_spill] sm:$0xff] }
  0x50   :  { %1719 = vst [vmem:[#allocation39_spill] sm:$0xff] %v1174_v5  ;;  %v565_v53 = vadd.f32 %v561_v7, %v506_v6  ;;  %v1655_v19 = vmax.f32 %v1174_v5, 0.0  ;;  %v1183_v47 = vadd.f32 %v976_v21, %v253_v0  ;;  %v403_v39 = vmul.f32 %v812_v11, %v1095_v20 }
  0x51   :  { %v157_v2 = vmul.f32 %v1010_v38, %v1656_v58  ;;  %v312_v59 = vadd.f32 %v308_v56, %v303_v44  ;;  %v362_v41 = vadd.f32 %v358_v9, %v353_v36  ;;  %v408_v18 = vmul.f32 %v862_v28, %v1100_v49  ;;  %v1724_v58 = vld [vmem:[#allocation26_spill] sm:$0xff] }
  0x52   :  { %1720 = vst [vmem:[#allocation40_spill] sm:$0xff] %v1183_v47  ;;  %v579_v46 = vadd.f32 %v1114_v29, %v565_v53  ;;  %v208_v6 = vmul.f32 %v1013_v42, %v1655_v19  ;;  %v1654_v50 = vmax.f32 %v1183_v47, 0.0  ;;  %v417_v55 = vmul.f32 %v955_v3, %v1102_v13  ;;  %v1229_v47 = vld [vmem:[#allocation6 + $0x30] sm:$0xff] }
  0x53   :  { %v1200_v7 = vadd.f32 %v979_v25, %v312_v59  ;;  %v371_v0 = vadd.f32 %v367_v24, %v362_v41  ;;  %v412_v56 = vadd.f32 %v408_v18, %v403_v39  ;;  %v426_v9 = vmul.f32 %v1003_v37, %v1104_v63 }
  0x54   :  { %583 = vst [vmem:[#allocation7] sm:$0xff] %v579_v46  ;;  %v212_v44 = vadd.f32 %v208_v6, %v157_v2  ;;  %v267_v36 = vmul.f32 %v1024_v48, %v1654_v50  ;;  %v462_v53 = vmul.f32 %v820_v14, %v1095_v20  ;;  %v467_v60 = vmul.f32 %v1056_v12, %v1100_v49  ;;  %v1217_v2 = vld [vmem:[#allocation6 + $0x10] sm:$0xff]  ;;  %v1723_v50 = vld [vmem:[#allocation15_spill] sm:$0xff] }
  0x55   :  { %1721 = vst [vmem:[#allocation41_spill] sm:$0xff] %v1200_v7  ;;  %v1661_v59 = vmax.f32 %v1200_v7, 0.0  ;;  %v1213_v24 = vadd.f32 %v992_v31, %v371_v0  ;;  %v421_v39 = vadd.f32 %v417_v55, %v412_v56  ;;  %v476_v41 = vmul.f32 %v1059_v30, %v1102_v13  ;;  %v1726_v7 = vld [vmem:[#allocation35_spill] sm:$0xff] }
  0x56   :  { %v271_v18 = vadd.f32 %v267_v36, %v212_v44  ;;  %v471_v46 = vadd.f32 %v467_v60, %v462_v53  ;;  %v485_v6 = vmul.f32 %v1069_v43, %v1104_v63  ;;  %v521_v19 = vmul.f32 %v1723_v50, %v1095_v20  ;;  %v1231_v44 = vld [vmem:[#allocation6 + $0x50] sm:$0xff]  ;;  %v1725_v53 = vld [vmem:[#allocation34_spill] sm:$0xff] }
  0x57   :  { %1722 = vst [vmem:[#allocation42_spill] sm:$0xff] %v1213_v24  ;;  %v326_v52 = vmul.f32 %v1724_v58, %v1661_v59  ;;  %v1666_v0 = vmax.f32 %v1213_v24, 0.0  ;;  %v430_v55 = vadd.f32 %v426_v9, %v421_v39  ;;  %v526_v56 = vmul.f32 %v1084_v62, %v1100_v49  ;;  %v1233_v60 = vld [vmem:[#allocation6 + $0x70] sm:$0xff]  ;;  %v1727_v49 = vld [vmem:[#allocation28_spill] sm:$0xff] }
  0x58   :  { %v480_v36 = vadd.f32 %v476_v41, %v471_v46  ;;  %v535_v20 = vmul.f32 %v1725_v53, %v1102_v13  ;;  %v544_v5 = vmul.f32 %v1726_v7, %v1104_v63  ;;  %v117_v59 = vmul.f32 %v792_v1, %v1217_v2  ;;  %v1730_v63 = vld [vmem:[#allocation19_spill] sm:$0xff] }
  0x59   :  { %v330_v9 = vadd.f32 %v326_v52, %v271_v18  ;;  %v385_v39 = vmul.f32 %v1727_v49, %v1666_v0  ;;  %v1245_v62 = vadd.f32 %v1728_v54, %v430_v55  ;;  %v530_v58 = vadd.f32 %v526_v56, %v521_v19  ;;  %v1731_v0 = vld [vmem:[#allocation12_spill] sm:$0xff] }
  0x5a   :  { %v489_v50 = vadd.f32 %v485_v6, %v480_v36  ;;  %v122_v41 = vmul.f32 %v826_v16, %v1229_v47  ;;  %v131_v13 = vmul.f32 %v875_v33, %v1231_v44  ;;  %v140_v46 = vmul.f32 %v1730_v63, %v1233_v60  ;;  %v1733_v36 = vld [vmem:[#allocation30_spill] sm:$0xff] }
  0x5b   :  { %1729 = vst [vmem:[#allocation35_spill] sm:$0xff] %v1245_v62  ;;  %v389_v1 = vadd.f32 %v385_v39, %v330_v9  ;;  %v1672_v52 = vmax.f32 %v1245_v62, 0.0  ;;  %v539_v18 = vadd.f32 %v535_v20, %v530_v58  ;;  %v168_v24 = vmul.f32 %v1731_v0, %v1217_v2  ;;  %v1734_v20 = vld [vmem:[#allocation13_spill] sm:$0xff] }
  0x5c   :  { %v1257_v55 = vadd.f32 %v1072_v35, %v489_v50  ;;  %v126_v19 = vadd.f32 %v122_v41, %v117_v59  ;;  %v173_v6 = vmul.f32 %v828_v17, %v1229_v47  ;;  %v182_v56 = vmul.f32 %v878_v34, %v1231_v44 }
  0x5d   :  { %v444_v9 = vmul.f32 %v1733_v36, %v1672_v52  ;;  %v548_v39 = vadd.f32 %v544_v5, %v539_v18  ;;  %v191_v58 = vmul.f32 %v921_v51, %v1233_v60  ;;  %v227_v0 = vmul.f32 %v1734_v20, %v1217_v2  ;;  %v1736_v52 = vld [vmem:[#allocation18_spill] sm:$0xff]  ;;  %v1737_v18 = vld [vmem:[#allocation21_spill] sm:$0xff] }
  0x5e   :  { %1732 = vst [vmem:[#allocation28_spill] sm:$0xff] %v1257_v55  ;;  %v1676_v50 = vmax.f32 %v1257_v55, 0.0  ;;  %v135_v59 = vadd.f32 %v131_v13, %v126_v19  ;;  %v177_v41 = vadd.f32 %v173_v6, %v168_v24  ;;  %v232_v17 = vmul.f32 %v843_v22, %v1229_v47 }
  0x5f   :  { %v448_v35 = vadd.f32 %v444_v9, %v389_v1  ;;  %v1274_v34 = vadd.f32 %v1093_v26, %v548_v39  ;;  %v241_v5 = vmul.f32 %v1736_v52, %v1231_v44  ;;  %v250_v62 = vmul.f32 %v1737_v18, %v1233_v60  ;;  %v1738_v1 = vld [vmem:[#allocation14_spill] sm:$0xff] }
  0x60   :  { %v503_v20 = vmul.f32 %v1075_v32, %v1676_v50  ;;  %v144_v51 = vadd.f32 %v140_v46, %v135_v59  ;;  %v186_v13 = vadd.f32 %v182_v56, %v177_v41  ;;  %v236_v24 = vadd.f32 %v232_v17, %v227_v0 }
  0x61   :  { %1735 = vst [vmem:[#allocation29_spill] sm:$0xff] %v1274_v34  ;;  %v1677_v19 = vmax.f32 %v1274_v34, 0.0  ;;  %v286_v6 = vmul.f32 %v1738_v1, %v1217_v2  ;;  %v291_v9 = vmul.f32 %v846_v23, %v1229_v47  ;;  %v300_v39 = vmul.f32 %v890_v40, %v1231_v44  ;;  %v1352_v34 = vld [vmem:[#allocation6 + $0x38] sm:$0xff] }
  0x62   :  { %v507_v52 = vadd.f32 %v503_v20, %v448_v35  ;;  %v1291_v18 = vadd.f32 %v962_v4, %v144_v51  ;;  %v195_v55 = vadd.f32 %v191_v58, %v186_v13  ;;  %v245_v50 = vadd.f32 %v241_v5, %v236_v24 }
  0x63   :  { %v562_v17 = vmul.f32 %v1111_v15, %v1677_v19  ;;  %v295_v0 = vadd.f32 %v291_v9, %v286_v6  ;;  %v309_v46 = vmul.f32 %v935_v57, %v1233_v60  ;;  %v345_v56 = vmul.f32 %v810_v10, %v1217_v2 }
  0x64   :  { %1739 = vst [vmem:[#allocation19_spill] sm:$0xff] %v1291_v18  ;;  %v1679_v59 = vmax.f32 %v1291_v18, 0.0  ;;  %v1302_v35 = vadd.f32 %v965_v8, %v195_v55  ;;  %v254_v51 = vadd.f32 %v250_v62, %v245_v50  ;;  %v350_v58 = vmul.f32 %v859_v27, %v1229_v47 }
  0x65   :  { %v566_v20 = vadd.f32 %v562_v17, %v507_v52  ;;  %v304_v41 = vadd.f32 %v300_v39, %v295_v0  ;;  %v359_v5 = vmul.f32 %v903_v45, %v1231_v44  ;;  %v368_v13 = vmul.f32 %v946_v61, %v1233_v60 }
  0x66   :  { %1740 = vst [vmem:[#allocation30_spill] sm:$0xff] %v1302_v35  ;;  %v158_v24 = vmul.f32 %v1010_v38, %v1679_v59  ;;  %v1678_v6 = vmax.f32 %v1302_v35, 0.0  ;;  %v1315_v55 = vadd.f32 %v976_v21, %v254_v51  ;;  %v354_v62 = vadd.f32 %v350_v58, %v345_v56  ;;  %v1345_v59 = vld [vmem:[#allocation6 + $0x18] sm:$0xff]  ;;  %v1746_v35 = vld [vmem:[#allocation33_spill] sm:$0xff] }
  0x67   :  { %v580_v50 = vadd.f32 %v1114_v29, %v566_v20  ;;  %v313_v52 = vadd.f32 %v309_v46, %v304_v41  ;;  %v404_v9 = vmul.f32 %v812_v11, %v1217_v2  ;;  %v409_v39 = vmul.f32 %v862_v28, %v1229_v47 }
  0x68   :  { %1741 = vst [vmem:[#allocation14_spill] sm:$0xff] %v1315_v55  ;;  %v209_v17 = vmul.f32 %v1013_v42, %v1678_v6  ;;  %v1680_v0 = vmax.f32 %v1315_v55, 0.0  ;;  %v363_v19 = vadd.f32 %v359_v5, %v354_v62  ;;  %v418_v51 = vmul.f32 %v955_v3, %v1231_v44 }
  0x69   :  { %584 = vst [vmem:[#allocation7 + $0x8] sm:$0xff] %v580_v50  ;;  %v1329_v56 = vadd.f32 %v979_v25, %v313_v52  ;;  %v413_v46 = vadd.f32 %v409_v39, %v404_v9  ;;  %v427_v58 = vmul.f32 %v1003_v37, %v1233_v60  ;;  %v463_v20 = vmul.f32 %v820_v14, %v1217_v2 }
  0x6a   :  { %v213_v41 = vadd.f32 %v209_v17, %v158_v24  ;;  %v268_v6 = vmul.f32 %v1024_v48, %v1680_v0  ;;  %v372_v5 = vadd.f32 %v368_v13, %v363_v19  ;;  %v468_v62 = vmul.f32 %v1056_v12, %v1229_v47  ;;  %v1744_v19 = vld [vmem:[#allocation15_spill] sm:$0xff] }
  0x6b   :  { %1742 = vst [vmem:[#allocation43_spill] sm:$0xff] %v1329_v56  ;;  %v1686_v50 = vmax.f32 %v1329_v56, 0.0  ;;  %v422_v52 = vadd.f32 %v418_v51, %v413_v46  ;;  %v477_v9 = vmul.f32 %v1059_v30, %v1231_v44  ;;  %v486_v39 = vmul.f32 %v1069_v43, %v1233_v60  ;;  %v1745_v51 = vld [vmem:[#allocation26_spill] sm:$0xff]  ;;  %v1747_v56 = vld [vmem:[#allocation11_spill] sm:$0xff] }
  0x6c   :  { %v272_v24 = vadd.f32 %v268_v6, %v213_v41  ;;  %v1348_v17 = vadd.f32 %v992_v31, %v372_v5  ;;  %v472_v0 = vadd.f32 %v468_v62, %v463_v20  ;;  %v522_v13 = vmul.f32 %v1744_v19, %v1217_v2  ;;  %v1361_v41 = vld [vmem:[#allocation6 + $0x58] sm:$0xff] }
  0x6d   :  { %v327_v46 = vmul.f32 %v1745_v51, %v1686_v50  ;;  %v431_v55 = vadd.f32 %v427_v58, %v422_v52  ;;  %v527_v18 = vmul.f32 %v1746_v35, %v1229_v47  ;;  %v536_v6 = vmul.f32 %v1725_v53, %v1231_v44  ;;  %v1363_v5 = vld [vmem:[#allocation6 + $0x78] sm:$0xff] }
  0x6e   :  { %1743 = vst [vmem:[#allocation44_spill] sm:$0xff] %v1348_v17  ;;  %v1688_v20 = vmax.f32 %v1348_v17, 0.0  ;;  %v481_v2 = vadd.f32 %v477_v9, %v472_v0  ;;  %v545_v62 = vmul.f32 %v1726_v7, %v1233_v60  ;;  %v118_v50 = vmul.f32 %v1747_v56, %v1345_v59 }
  0x6f   :  { %v331_v58 = vadd.f32 %v327_v46, %v272_v24  ;;  %v1371_v52 = vadd.f32 %v1728_v54, %v431_v55  ;;  %v531_v47 = vadd.f32 %v527_v18, %v522_v13  ;;  %v123_v44 = vmul.f32 %v826_v16, %v1352_v34  ;;  %v1749_v18 = vld [vmem:[#allocation12_spill] sm:$0xff]  ;;  %v1750_v16 = vld [vmem:[#allocation31_spill] sm:$0xff] }
  0x70   :  { %v386_v53 = vmul.f32 %v1727_v49, %v1688_v20  ;;  %v490_v35 = vadd.f32 %v486_v39, %v481_v2  ;;  %v132_v0 = vmul.f32 %v875_v33, %v1361_v41  ;;  %v141_v60 = vmul.f32 %v1730_v63, %v1363_v5  ;;  %v1751_v20 = vld [vmem:[#allocation16_spill] sm:$0xff]  ;;  %v1752_v2 = vld [vmem:[#allocation17_spill] sm:$0xff] }
  0x71   :  { %1748 = vst [vmem:[#allocation15_spill] sm:$0xff] %v1371_v52  ;;  %v440_v56 = vmax.f32 %v1371_v52, 0.0  ;;  %v540_v9 = vadd.f32 %v536_v6, %v531_v47  ;;  %v127_v55 = vadd.f32 %v123_v44, %v118_v50  ;;  %v169_v24 = vmul.f32 %v1749_v18, %v1345_v59  ;;  %v1753_v50 = vld [vmem:[#allocation20_spill] sm:$0xff] }
  0x72   :  { %v390_v13 = vadd.f32 %v386_v53, %v331_v58  ;;  %v1386_v46 = vadd.f32 %v1750_v16, %v490_v35  ;;  %v174_v39 = vmul.f32 %v1751_v20, %v1352_v34  ;;  %v183_v33 = vmul.f32 %v1752_v2, %v1361_v41  ;;  %v1754_v35 = vld [vmem:[#allocation13_spill] sm:$0xff] }
  0x73   :  { %v445_v63 = vmul.f32 %v1733_v36, %v440_v56  ;;  %v549_v17 = vadd.f32 %v545_v62, %v540_v9  ;;  %v136_v6 = vadd.f32 %v132_v0, %v127_v55  ;;  %v192_v47 = vmul.f32 %v1753_v50, %v1363_v5  ;;  %v1755_v62 = vld [vmem:[#allocation18_spill] sm:$0xff] }
  0x74   :  { %v499_v53 = vmax.f32 %v1386_v46, 0.0  ;;  %v178_v58 = vadd.f32 %v174_v39, %v169_v24  ;;  %v228_v44 = vmul.f32 %v1754_v35, %v1345_v59  ;;  %v233_v20 = vmul.f32 %v843_v22, %v1352_v34  ;;  %v1756_v39 = vld [vmem:[#allocation21_spill] sm:$0xff] }
  0x75   :  { %v449_v18 = vadd.f32 %v445_v63, %v390_v13  ;;  %v1403_v2 = vadd.f32 %v1093_v26, %v549_v17  ;;  %v145_v52 = vadd.f32 %v141_v60, %v136_v6  ;;  %v242_v0 = vmul.f32 %v1755_v62, %v1361_v41 }
  0x76   :  { %v504_v9 = vmul.f32 %v1075_v32, %v499_v53  ;;  %v187_v55 = vadd.f32 %v183_v33, %v178_v58  ;;  %v237_v24 = vadd.f32 %v233_v20, %v228_v44  ;;  %v251_v50 = vmul.f32 %v1756_v39, %v1363_v5 }
  0x77   :  { %v558_v35 = vmax.f32 %v1403_v2, 0.0  ;;  %v1414_v22 = vadd.f32 %v962_v4, %v145_v52  ;;  %v287_v17 = vmul.f32 %v1738_v1, %v1345_v59  ;;  %v292_v60 = vmul.f32 %v846_v23, %v1352_v34 }
  0x78   :  { %v508_v13 = vadd.f32 %v504_v9, %v449_v18  ;;  %v196_v63 = vadd.f32 %v192_v47, %v187_v55  ;;  %v246_v6 = vadd.f32 %v242_v0, %v237_v24  ;;  %v301_v33 = vmul.f32 %v890_v40, %v1361_v41 }
  0x79   :  { %v563_v58 = vmul.f32 %v1111_v15, %v558_v35  ;;  %v154_v44 = vmax.f32 %v1414_v22, 0.0  ;;  %v296_v4 = vadd.f32 %v292_v60, %v287_v17  ;;  %v310_v52 = vmul.f32 %v935_v57, %v1363_v5 }
  0x7a   :  { %v1429_v1 = vadd.f32 %v965_v8, %v196_v63  ;;  %v255_v23 = vadd.f32 %v251_v50, %v246_v6  ;;  %v346_v47 = vmul.f32 %v810_v10, %v1345_v59  ;;  %v351_v40 = vmul.f32 %v859_v27, %v1352_v34 }
  0x7b   :  { %v567_v20 = vadd.f32 %v563_v58, %v508_v13  ;;  %v159_v18 = vmul.f32 %v1010_v38, %v154_v44  ;;  %v305_v62 = vadd.f32 %v301_v33, %v296_v4  ;;  %v360_v0 = vmul.f32 %v903_v45, %v1361_v41 }
  0x7c   :  { %v205_v57 = vmax.f32 %v1429_v1, 0.0  ;;  %v1442_v8 = vadd.f32 %v976_v21, %v255_v23  ;;  %v355_v9 = vadd.f32 %v351_v40, %v346_v47  ;;  %v369_v10 = vmul.f32 %v946_v61, %v1363_v5 }
  0x7d   :  { %v581_v27 = vadd.f32 %v1114_v29, %v567_v20  ;;  %v314_v55 = vadd.f32 %v310_v52, %v305_v62  ;;  %v405_v38 = vmul.f32 %v812_v11, %v1345_v59  ;;  %v410_v45 = vmul.f32 %v862_v28, %v1352_v34  ;;  %v1758_v52 = vld [vmem:[#allocation34_spill] sm:$0xff] }
  0x7e   :  { %v210_v21 = vmul.f32 %v1013_v42, %v205_v57  ;;  %v264_v24 = vmax.f32 %v1442_v8, 0.0  ;;  %v364_v39 = vadd.f32 %v360_v0, %v355_v9  ;;  %v419_v61 = vmul.f32 %v955_v3, %v1361_v41 }
  0x7f   :  { %585 = vst [vmem:[#allocation7 + $0x10] sm:$0xff] %v581_v27  ;;  %v1464_v11 = vadd.f32 %v979_v25, %v314_v55  ;;  %v414_v50 = vadd.f32 %v410_v45, %v405_v38  ;;  %v428_v28 = vmul.f32 %v1003_v37, %v1363_v5  ;;  %v464_v42 = vmul.f32 %v820_v14, %v1345_v59  ;;  %v1761_v27 = vld [vmem:[#allocation23_spill] sm:$0xff]  ;;  %v1763_v38 = vld [vmem:[#allocation24_spill] sm:$0xff] }
  0x80   :  { %v214_v17 = vadd.f32 %v210_v21, %v159_v18  ;;  %v269_v3 = vmul.f32 %v1024_v48, %v264_v24  ;;  %v373_v60 = vadd.f32 %v369_v10, %v364_v39  ;;  %v469_v13 = vmul.f32 %v1056_v12, %v1352_v34 }
  0x81   :  { %v323_v25 = vmax.f32 %v1464_v11, 0.0  ;;  %v423_v63 = vadd.f32 %v419_v61, %v414_v50  ;;  %v478_v14 = vmul.f32 %v1059_v30, %v1361_v41  ;;  %v487_v37 = vmul.f32 %v1069_v43, %v1363_v5  ;;  %v1757_v30 = vld [vmem:[#allocation33_spill] sm:$0xff] }
  0x82   :  { %v273_v6 = vadd.f32 %v269_v3, %v214_v17  ;;  %v1485_v48 = vadd.f32 %v992_v31, %v373_v60  ;;  %v473_v33 = vadd.f32 %v469_v13, %v464_v42  ;;  %v523_v12 = vmul.f32 %v1744_v19, %v1345_v59  ;;  %v1765_v3 = vld [vmem:[#allocation25_spill] sm:$0xff] }
  0x83   :  { %v328_v58 = vmul.f32 %v1745_v51, %v323_v25  ;;  %v432_v4 = vadd.f32 %v428_v28, %v423_v63  ;;  %v528_v43 = vmul.f32 %v1757_v30, %v1352_v34  ;;  %v537_v31 = vmul.f32 %v1758_v52, %v1361_v41  ;;  %v1759_v34 = vld [vmem:[#allocation22_spill] sm:$0xff] }
  0x84   :  { %v382_v23 = vmax.f32 %v1485_v48, 0.0  ;;  %v482_v47 = vadd.f32 %v478_v14, %v473_v33  ;;  %v546_v59 = vmul.f32 %v1726_v7, %v1363_v5  ;;  %v160_v19 = vstv %s1446_s24  ;;  %v1767_v33 = vld [vmem:[#allocation27_spill] sm:$0xff] }
  0x85   :  { %v332_v51 = vadd.f32 %v328_v58, %v273_v6  ;;  %v1505_v40 = vadd.f32 %v1728_v54, %v432_v4  ;;  %v532_v20 = vadd.f32 %v528_v43, %v523_v12  ;;  %v1760_v18 = vmax.f32 %v1759_v34, 0.0  ;;  %v1769_v4 = vld [vmem:[#allocation32_spill] sm:$0xff] }
  0x86   :  { %v387_v62 = vmul.f32 %v1727_v49, %v382_v23  ;;  %v491_v0 = vadd.f32 %v487_v37, %v482_v47  ;;  %v215_v7 = vstv %s1459_s25  ;;  %v274_v5 = vstv %s1461_s26 }
  0x87   :  { %v161_v41 = vmul.f32 %v160_v19, %v1760_v18  ;;  %v441_v9 = vmax.f32 %v1505_v40, 0.0  ;;  %v541_v10 = vadd.f32 %v537_v31, %v532_v20  ;;  %v1762_v55 = vmax.f32 %v1761_v27, 0.0  ;;  %v1773_v18 = vld [vmem:[#allocation39_spill] sm:$0xff] }
  0x88   :  { %v1764_v45 = vmax.f32 %v1763_v38, 0.0  ;;  %v391_v39 = vadd.f32 %v387_v62, %v332_v51  ;;  %v1520_v61 = vadd.f32 %v1750_v16, %v491_v0  ;;  %v333_v50 = vstv %s1475_s27  ;;  %v1771_v51 = vld [vmem:[#allocation38_spill] sm:$0xff]  ;;  %v1775_v0 = vld [vmem:[#allocation40_spill] sm:$0xff] }
  0x89   :  { %v216_v54 = vmul.f32 %v215_v7, %v1762_v55  ;;  %v392_v49 = vstv %s1477_s28  ;;  %v446_v28 = vmul.f32 %v1733_v36, %v441_v9  ;;  %v550_v42 = vadd.f32 %v546_v59, %v541_v10 }
  0x8a   :  { %v275_v21 = vmul.f32 %v274_v5, %v1764_v45  ;;  %v1766_v60 = vmax.f32 %v1765_v3, 0.0  ;;  %v500_v63 = vmax.f32 %v1520_v61, 0.0  ;;  %v451_v14 = vstv %s1489_s30 }
  0x8b   :  { %v220_v17 = vadd.f32 %v216_v54, %v161_v41  ;;  %v450_v37 = vadd.f32 %v446_v28, %v391_v39  ;;  %v1532_v16 = vadd.f32 %v1093_v26, %v550_v42  ;;  %v1768_v12 = vmax.f32 %v1767_v33, 0.0  ;;  %v1777_v54 = vld [vmem:[#allocation36_spill] sm:$0xff] }
  0x8c   :  { %v334_v13 = vmul.f32 %v333_v50, %v1766_v60  ;;  %v505_v36 = vmul.f32 %v1075_v32, %v500_v63  ;;  %v1770_v30 = vmax.f32 %v1769_v4, 0.0  ;;  %v510_v52 = vstv %s1501_s3 }
  0x8d   :  { %v279_v6 = vadd.f32 %v275_v21, %v220_v17  ;;  %v393_v58 = vmul.f32 %v392_v49, %v1768_v12  ;;  %v559_v31 = vmax.f32 %v1532_v16, 0.0  ;;  %v569_v59 = vstv %s669_s4  ;;  %v1779_v21 = vld [vmem:[#allocation37_spill] sm:$0xff]  ;;  %v1785_v12 = vld [vmem:[#allocation30_spill] sm:$0xff] }
  0x8e   :  { %v452_v43 = vmul.f32 %v451_v14, %v1770_v30  ;;  %v1772_v20 = vmax.f32 %v1771_v51, 0.0  ;;  %v509_v34 = vadd.f32 %v505_v36, %v450_v37  ;;  %v1774_v41 = vmax.f32 %v1773_v18, 0.0  ;;  %v1781_v17 = vld [vmem:[#allocation41_spill] sm:$0xff] }
  0x8f   :  { %v338_v47 = vadd.f32 %v334_v13, %v279_v6  ;;  %v1776_v10 = vmax.f32 %v1775_v0, 0.0  ;;  %v564_v32 = vmul.f32 %v1111_v15, %v559_v31  ;;  %v1778_v38 = vmax.f32 %v1777_v54, 0.0  ;;  %v1783_v13 = vld [vmem:[#allocation19_spill] sm:$0xff]  ;;  %v1787_v15 = vld [vmem:[#allocation14_spill] sm:$0xff] }
  0x90   :  { %v162_v26 = vmul.f32 %v160_v19, %v1772_v20  ;;  %v217_v62 = vmul.f32 %v215_v7, %v1774_v41  ;;  %v1780_v39 = vmax.f32 %v1779_v21, 0.0  ;;  %v1782_v3 = vmax.f32 %v1781_v17, 0.0  ;;  %v1789_v20 = vld [vmem:[#allocation42_spill] sm:$0xff]  ;;  %v1795_v17 = vld [vmem:[#allocation44_spill] sm:$0xff] }
  0x91   :  { %v276_v27 = vmul.f32 %v274_v5, %v1776_v10  ;;  %v397_v55 = vadd.f32 %v393_v58, %v338_v47  ;;  %v511_v45 = vmul.f32 %v510_v52, %v1778_v38  ;;  %v1784_v37 = vmax.f32 %v1783_v13, 0.0  ;;  %v1791_v10 = vld [vmem:[#allocation43_spill] sm:$0xff] }
  0x92   :  { %v570_v28 = vmul.f32 %v569_v59, %v1780_v39  ;;  %v221_v42 = vadd.f32 %v217_v62, %v162_v26  ;;  %v335_v60 = vmul.f32 %v333_v50, %v1782_v3  ;;  %v568_v6 = vadd.f32 %v564_v32, %v509_v34 }
  0x93   :  { %v163_v16 = vmul.f32 %v160_v19, %v1784_v37  ;;  %v456_v33 = vadd.f32 %v452_v43, %v397_v55  ;;  %v1786_v36 = vmax.f32 %v1785_v12, 0.0  ;;  %v1788_v58 = vmax.f32 %v1787_v15, 0.0  ;;  %v1793_v43 = vld [vmem:[#allocation35_spill] sm:$0xff] }
  0x94   :  { %v587_v47 = vstv %s671_s5  ;;  %v280_v51 = vadd.f32 %v276_v27, %v221_v42  ;;  %v1790_v18 = vmax.f32 %v1789_v20, 0.0  ;;  %v582_v26 = vadd.f32 %v1114_v29, %v568_v6 }
  0x95   :  { %v218_v4 = vmul.f32 %v215_v7, %v1786_v36  ;;  %v277_v30 = vmul.f32 %v274_v5, %v1788_v58  ;;  %v515_v62 = vadd.f32 %v511_v45, %v456_v33  ;;  %v1792_v54 = vmax.f32 %v1791_v10, 0.0 }
  0x96   :  { %v394_v41 = vmul.f32 %v392_v49, %v1790_v18  ;;  %v339_v34 = vadd.f32 %v335_v60, %v280_v51  ;;  %v1794_v32 = vmax.f32 %v1793_v43, 0.0  ;;  %v164_v21 = vmul.f32 %v160_v19, %v154_v44  ;;  %586 = vst [vmem:[#allocation7 + $0x18] sm:$0xff] %v582_v26  ;;  %v1797_v60 = vld [vmem:[#allocation28_spill] sm:$0xff] }
  0x97   :  { %v222_v0 = vadd.f32 %v218_v4, %v163_v16  ;;  %v336_v38 = vmul.f32 %v333_v50, %v1792_v54  ;;  %v219_v27 = vmul.f32 %v215_v7, %v205_v57  ;;  %v574_v39 = vadd.f32 %v570_v28, %v515_v62  ;;  %v1800_v28 = vld [vmem:[#allocation29_spill] sm:$0xff] }
  0x98   :  { %v453_v55 = vmul.f32 %v451_v14, %v1794_v32  ;;  %v1796_v29 = vmax.f32 %v1795_v17, 0.0  ;;  %v278_v3 = vmul.f32 %v274_v5, %v264_v24  ;;  %v398_v13 = vadd.f32 %v394_v41, %v339_v34 }
  0x99   :  { %v281_v42 = vadd.f32 %v277_v30, %v222_v0  ;;  %v1798_v37 = vmax.f32 %v1797_v60, 0.0  ;;  %v223_v6 = vadd.f32 %v219_v27, %v164_v21  ;;  %v337_v22 = vmul.f32 %v333_v50, %v323_v25 }
  0x9a   :  { %v395_v45 = vmul.f32 %v392_v49, %v1796_v29  ;;  %v588_v44 = vadd.f32 %v587_v47, %v574_v39  ;;  %v454_v19 = vmul.f32 %v451_v14, %v440_v56  ;;  %v457_v7 = vadd.f32 %v453_v55, %v398_v13 }
  0x9b   :  { %v512_v16 = vmul.f32 %v510_v52, %v1798_v37  ;;  %v340_v1 = vadd.f32 %v336_v38, %v281_v42  ;;  %v1801_v33 = vmax.f32 %v1800_v28, 0.0  ;;  %v282_v36 = vadd.f32 %v278_v3, %v223_v6 }
  0x9c   :  { %v396_v8 = vmul.f32 %v392_v49, %v382_v23  ;;  %593 = vst [vmem:[#allocation7 + $0x20] sm:$0xff] %v588_v44  ;;  %v513_v5 = vmul.f32 %v510_v52, %v499_v53  ;;  %v455_v50 = vmul.f32 %v451_v14, %v441_v9  ;;  %v572_v56 = vmul.f32 %v569_v59, %v558_v35 }
  0x9d   :  { %v571_v12 = vmul.f32 %v569_v59, %v1801_v33  ;;  %v399_v24 = vadd.f32 %v395_v45, %v340_v1  ;;  %v516_v11 = vadd.f32 %v512_v16, %v457_v7  ;;  %v341_v25 = vadd.f32 %v337_v22, %v282_v36 }
  0x9e   :  { %v514_v48 = vmul.f32 %v510_v52, %v500_v63  ;;  %v573_v51 = vmul.f32 %v569_v59, %v559_v31 }
  0x9f   :  { %v458_v4 = vadd.f32 %v454_v19, %v399_v24  ;;  %v575_v15 = vadd.f32 %v571_v12, %v516_v11  ;;  %v400_v58 = vadd.f32 %v396_v8, %v341_v25 }
  0xa1   :  { %v517_v23 = vadd.f32 %v513_v5, %v458_v4  ;;  %v589_v49 = vadd.f32 %v587_v47, %v575_v15  ;;  %v459_v30 = vadd.f32 %v455_v50, %v400_v58 }
  0xa3   :  { %v576_v46 = vadd.f32 %v572_v56, %v517_v23  ;;  %594 = vst [vmem:[#allocation7 + $0x28] sm:$0xff] %v589_v49  ;;  %v518_v53 = vadd.f32 %v514_v48, %v459_v30 }
  0xa5   :  { %v590_v20 = vadd.f32 %v587_v47, %v576_v46  ;;  %v577_v40 = vadd.f32 %v573_v51, %v518_v53 }
  0xa7   :  { %595 = vst [vmem:[#allocation7 + $0x30] sm:$0xff] %v590_v20  ;;  %v591_v9 = vadd.f32 %v587_v47, %v577_v40 }
  0xa9   :  { %596 = vst [vmem:[#allocation7 + $0x38] sm:$0xff] %v591_v9 }
  0xaa   :  { %720 = shalt.err (!%p717_p1)
}
  0xab   :  { %s721_s11 = scalar_lea.hbm %s1612_s2, 1024 }
  0xac   :  { %p722_p2 = scmp.ne.s32.totalorder %s1612_s2, %s721_s11  ;;  %p725_p3 = scmp.lt.u32.totalorder %s721_s11, %s1612_s2 }
  0xae   :  { %p727_p4 = pnand %p725_p3, %p722_p2 }
  0xb0   :  { %730 = shalt.err (!%p727_p4)
}
  0xb1   :  { %608 = dma.vmem_to_hbm [thread:$0]  %s603_s7, 1024, %s1612_s2, [#allocation4], %s739_s0, %s739_s0, %s740_s29  }
  0xb2   :  { %735 = dma.done.wait [#allocation4], 1024  }
  0xb3   :  { %736 = vsyncadd [#allocation4], 4294966272 }
  0xb4   :  { %612 = vsyncpa [#allocation3], 1 }
  0xb5   :  { %613 = vsyncpa [#allocation4], 1 }
  0xb6   :  { %614 = vsyncpa [#allocation5], 1 }

</bundles_post_ra>
